<compile_context>
chip_gen: v7x
topology: tpu7x:2x2x1
jax: 0.10.0
libtpu: 0.0.40
codegen_flags: <defaults>
</compile_context>

<pallas_src>
import functools

import jax
import jax.numpy as jnp
from jax.experimental import pallas as pl
from jax.experimental.pallas import tpu as pltpu

CLASSES_NUM = 2


def _round_up(x: int, m: int) -> int:
    return ((x + m - 1) // m) * m


def _deepsic_kernel(rxt_ref, w1_ref, b1_ref, w2_ref, b2_ref, out_ref):
    # rxt_ref: (1, Fp, TB)  inputs: features on sublanes, batch on lanes
    # w1_ref : (1, Hp, Fp)  fc1 weight, native (out,in) layout, zero-padded
    # b1_ref : (1, Hp, 1)
    # w2_ref : (1, Cs, Hp)  fc2 weight, native (out,in) layout, zero-padded
    # b2_ref : (1, Cs, 1)
    # out_ref: (1, Cs, TB)  lane-dense output tile (classes on sublanes)
    rxt = rxt_ref[0]                      # (Fp, TB)
    w1 = w1_ref[0]                        # (Hp, Fp)
    w2 = w2_ref[0]                        # (Cs, Hp)

    # fc1 + ReLU: MXU matmul, bias is a cheap lane-broadcast, ReLU on VPU.
    h = jnp.dot(w1, rxt, preferred_element_type=jnp.float32) + b1_ref[0]
    h = jnp.maximum(h, 0.0)               # (Hp, TB)

    # fc2: (Cs, Hp) @ (Hp, TB) -> (Cs, TB); TB lanes -> unmasked stores.
    o = jnp.dot(w2, h, preferred_element_type=jnp.float32) + b2_ref[0]
    out_ref[0] = o.astype(out_ref.dtype)


@functools.partial(jax.jit, static_argnames=("block_b",))
def deepsic_forward_batched(rx, w1, b1, w2, b2, *, block_b=2048):
    """Fused fc1 -> ReLU -> fc2 for D detectors at once.

    rx: (D, B, F) float32 per-detector inputs
    w1: (D, H, F), b1: (D, H), w2: (D, C, H), b2: (D, C)   (PyTorch layouts)
    returns: (D, B, C) float32
    """
    D, B, F = rx.shape
    H = w1.shape[1]
    C = w2.shape[1]

    # TPU-friendly padded sizes (zero padding -> numerically exact).
    Fp = _round_up(F, 8)          # feature sublanes
    Hp = _round_up(H, 128)        # hidden (lanes of fc1 weight / sublanes of h)
    Cs = _round_up(C, 8)          # class sublanes (only 8, not 128!)
    TB = min(_round_up(block_b, 128), _round_up(B, 128))  # batch lanes / tile
    Bp = _round_up(B, TB)

    # Host-side layout plumbing: put batch on the lane dim once, pad once.
    rxt = jnp.swapaxes(rx, 1, 2)                                        # (D,F,B)
    rxt_p = jnp.zeros((D, Fp, Bp), jnp.float32).at[:, :F, :B].set(rxt)
    w1_p = jnp.zeros((D, Hp, Fp), jnp.float32).at[:, :H, :F].set(w1)
    b1_p = jnp.zeros((D, Hp, 1), jnp.float32).at[:, :H, 0].set(b1)
    w2_p = jnp.zeros((D, Cs, Hp), jnp.float32).at[:, :C, :H].set(w2)
    b2_p = jnp.zeros((D, Cs, 1), jnp.float32).at[:, :C, 0].set(b2)

    grid = (D, Bp // TB)   # detectors (slow) x batch tiles (fast)

    out_p = pl.pallas_call(
        _deepsic_kernel,
        out_shape=jax.ShapeDtypeStruct((D, Cs, Bp), jnp.float32),
        grid=grid,
        in_specs=[
            # rx tile: changes with detector and batch-tile index.
            pl.BlockSpec((1, Fp, TB), lambda d, i: (d, 0, i)),
            # Weights / biases: depend only on the detector -> stay resident
            # in VMEM across the (fast) batch-tile sweep.
            pl.BlockSpec((1, Hp, Fp), lambda d, i: (d, 0, 0)),
            pl.BlockSpec((1, Hp, 1), lambda d, i: (d, 0, 0)),
            pl.BlockSpec((1, Cs, Hp), lambda d, i: (d, 0, 0)),
            pl.BlockSpec((1, Cs, 1), lambda d, i: (d, 0, 0)),
        ],
        out_specs=pl.BlockSpec((1, Cs, TB), lambda d, i: (d, 0, i)),
        compiler_params=pltpu.CompilerParams(
            dimension_semantics=("parallel", "parallel")),
    )(rxt_p, w1_p, b1_p, w2_p, b2_p)

    # Strip class/batch padding and go back to (D, B, C) for the caller.
    return jnp.swapaxes(out_p[:, :C, :B], 1, 2)


def deepsic_forward(rx, w1, b1, w2, b2):
    """Single-detector forward matching the PyTorch module semantics.

    rx: (B, F); w1: (H, F); b1: (H,); w2: (C, H); b2: (C,) -> (B, C)
    """
    out = deepsic_forward_batched(rx[None], w1[None], b1[None], w2[None],
                                  b2[None])
    return out[0]


def init_params(key, n_ant, n_user, hidden_size, n_detectors):
    """PyTorch-Linear-shaped params, stacked over n_detectors detectors.

    fc1.weight: (hidden, linear_input), fc2.weight: (CLASSES_NUM, hidden).
    """
    linear_input = n_ant + (n_user - 1)
    k1, k2, k3, k4 = jax.random.split(key, 4)
    lim1 = 1.0 / jnp.sqrt(linear_input)
    lim2 = 1.0 / jnp.sqrt(hidden_size)
    w1 = jax.random.uniform(k1, (n_detectors, hidden_size, linear_input),
                            jnp.float32, -lim1, lim1)
    b1 = jax.random.uniform(k2, (n_detectors, hidden_size),
                            jnp.float32, -lim1, lim1)
    w2 = jax.random.uniform(k3, (n_detectors, CLASSES_NUM, hidden_size),
                            jnp.float32, -lim2, lim2)
    b2 = jax.random.uniform(k4, (n_detectors, CLASSES_NUM),
                            jnp.float32, -lim2, lim2)
    return w1, b1, w2, b2


def reference_forward(rx, w1, b1, w2, b2):
    # rx: (B, F); one detector; PyTorch-layout weights.
    h = jnp.maximum(rx @ w1.T + b1, 0.0)
    return h @ w2.T + b2


if __name__ == "__main__":
    # DeepSIC-consistent small shapes: n_ant=4, n_user=4 -> in_features=7,
    # hidden=32, two classes, 256 symbols per detector, one detector per user.
    n_ant = 4
    n_user = 4
    hidden_size = 32
    n_detectors = n_user
    batch = 256
    in_features = n_ant + (n_user - 1)

    key = jax.random.PRNGKey(0)
    k_params, k_rx = jax.random.split(key)
    w1, b1, w2, b2 = init_params(k_params, n_ant, n_user, hidden_size,
                                 n_detectors)
    rx = jax.random.normal(k_rx, (n_detectors, batch, in_features),
                           jnp.float32)

    out = jax.block_until_ready(deepsic_forward_batched(rx, w1, b1, w2, b2))
    ref = jax.vmap(reference_forward)(rx, w1, b1, w2, b2)
    assert out.shape == (n_detectors, batch, CLASSES_NUM)
    # Tolerance covers MXU default-precision rounding: kernel contracts in a
    # transposed orientation vs. the reference matmuls.
    assert jnp.allclose(out, ref, atol=1e-2, rtol=1e-2), "mismatch vs. reference"

    # Single-detector path (original module semantics) also checked.
    out_single = jax.block_until_ready(
        deepsic_forward(rx[0], w1[0], b1[0], w2[0], b2[0]))
    assert out_single.shape == (batch, CLASSES_NUM)
    assert jnp.allclose(out_single, ref[0], atol=1e-2, rtol=1e-2)

    print("KERNEL_OK")
</pallas_src>

<mosaic_0001>
module attributes {stable_mosaic.version = 11 : i64} {
  func.func @_deepsic_kernel(%arg0: i32, %arg1: i32, %arg2: memref<1x8x256xf32, #tpu.memory_space<vmem>>, %arg3: memref<1x128x8xf32, #tpu.memory_space<vmem>>, %arg4: memref<1x128x1xf32, #tpu.memory_space<vmem>>, %arg5: memref<1x8x128xf32, #tpu.memory_space<vmem>>, %arg6: memref<1x8x1xf32, #tpu.memory_space<vmem>>, %arg7: memref<1x8x256xf32, #tpu.memory_space<vmem>>) attributes {dimension_semantics = [#tpu.dimension_semantics<parallel>, #tpu.dimension_semantics<parallel>], iteration_bounds = array<i64: 4, 1>, scalar_prefetch = 0 : i64, scratch_operands = 0 : i64, tpu.core_type = #tpu.core_type<tc>, window_params = [{transform_indices = @transform_0, window_bounds = array<i64: 1, 8, 256>}, {transform_indices = @transform_1, window_bounds = array<i64: 1, 128, 8>}, {transform_indices = @transform_2, window_bounds = array<i64: 1, 128, 1>}, {transform_indices = @transform_3, window_bounds = array<i64: 1, 8, 128>}, {transform_indices = @transform_4, window_bounds = array<i64: 1, 8, 1>}, {transform_indices = @transform_5, window_bounds = array<i64: 1, 8, 256>}]} {
    %c0 = arith.constant 0 : index
    %c0_0 = arith.constant 0 : index
    %c0_1 = arith.constant 0 : index
    %0 = vector.load %arg2[%c0, %c0_0, %c0_1] : memref<1x8x256xf32, #tpu.memory_space<vmem>>, vector<1x8x256xf32>
    %1 = vector.shape_cast %0 : vector<1x8x256xf32> to vector<8x256xf32>
    %c0_2 = arith.constant 0 : index
    %c0_3 = arith.constant 0 : index
    %c0_4 = arith.constant 0 : index
    %2 = vector.load %arg3[%c0_2, %c0_3, %c0_4] : memref<1x128x8xf32, #tpu.memory_space<vmem>>, vector<1x128x8xf32>
    %3 = vector.shape_cast %2 : vector<1x128x8xf32> to vector<128x8xf32>
    %c0_5 = arith.constant 0 : index
    %c0_6 = arith.constant 0 : index
    %c0_7 = arith.constant 0 : index
    %4 = vector.load %arg5[%c0_5, %c0_6, %c0_7] : memref<1x8x128xf32, #tpu.memory_space<vmem>>, vector<1x8x128xf32>
    %5 = vector.shape_cast %4 : vector<1x8x128xf32> to vector<8x128xf32>
    %cst = arith.constant dense<0.000000e+00> : vector<128x256xf32>
    %6 = tpu.matmul %3, %1, %cst {dimension_numbers = #tpu.dot_dimension_numbers<[1], [0], [0], [1], [0, 0, 1, 1], [], []>} : vector<128x8xf32>, vector<8x256xf32>, vector<128x256xf32> -> vector<128x256xf32>
    %c0_8 = arith.constant 0 : index
    %c0_9 = arith.constant 0 : index
    %c0_10 = arith.constant 0 : index
    %7 = vector.load %arg4[%c0_8, %c0_9, %c0_10] : memref<1x128x1xf32, #tpu.memory_space<vmem>>, vector<1x128x1xf32>
    %8 = vector.shape_cast %7 : vector<1x128x1xf32> to vector<128x1xf32>
    %9 = vector.broadcast %8 : vector<128x1xf32> to vector<128x256xf32>
    %10 = arith.addf %6, %9 : vector<128x256xf32>
    %cst_11 = arith.constant 0.000000e+00 : f32
    %11 = vector.broadcast %cst_11 : f32 to vector<128x256xf32>
    %12 = arith.maximumf %10, %11 : vector<128x256xf32>
    %cst_12 = arith.constant dense<0.000000e+00> : vector<8x256xf32>
    %13 = tpu.matmul %5, %12, %cst_12 {dimension_numbers = #tpu.dot_dimension_numbers<[1], [0], [0], [1], [0, 0, 1, 1], [], []>} : vector<8x128xf32>, vector<128x256xf32>, vector<8x256xf32> -> vector<8x256xf32>
    %c0_13 = arith.constant 0 : index
    %c0_14 = arith.constant 0 : index
    %c0_15 = arith.constant 0 : index
    %14 = vector.load %arg6[%c0_13, %c0_14, %c0_15] : memref<1x8x1xf32, #tpu.memory_space<vmem>>, vector<1x8x1xf32>
    %15 = vector.shape_cast %14 : vector<1x8x1xf32> to vector<8x1xf32>
    %16 = vector.broadcast %15 : vector<8x1xf32> to vector<8x256xf32>
    %17 = arith.addf %13, %16 : vector<8x256xf32>
    %c0_16 = arith.constant 0 : index
    %c0_17 = arith.constant 0 : index
    %c0_18 = arith.constant 0 : index
    %18 = vector.load %arg7[%c0_16, %c0_17, %c0_18] : memref<1x8x256xf32, #tpu.memory_space<vmem>>, vector<1x8x256xf32>
    %19 = vector.shape_cast %18 : vector<1x8x256xf32> to vector<8x256xf32>
    %20 = vector.shape_cast %17 : vector<8x256xf32> to vector<1x8x256xf32>
    tpu.vector_store %arg7[%c0_16, %c0_17, %c0_18], %20 {strides = array<i32>} : memref<1x8x256xf32, #tpu.memory_space<vmem>>, vector<1x8x256xf32>,
    return
  }
  func.func @transform_0(%arg0: i32, %arg1: i32) -> (i32, i32, i32) {
    %c0_i32 = arith.constant 0 : i32
    %c0_i32_0 = arith.constant 0 : i32
    return %arg0, %c0_i32, %arg1 : i32, i32, i32
  }
  func.func @transform_1(%arg0: i32, %arg1: i32) -> (i32, i32, i32) {
    %c0_i32 = arith.constant 0 : i32
    %c0_i32_0 = arith.constant 0 : i32
    %c0_i32_1 = arith.constant 0 : i32
    return %arg0, %c0_i32, %c0_i32_0 : i32, i32, i32
  }
  func.func @transform_2(%arg0: i32, %arg1: i32) -> (i32, i32, i32) {
    %c0_i32 = arith.constant 0 : i32
    %c0_i32_0 = arith.constant 0 : i32
    %c0_i32_1 = arith.constant 0 : i32
    return %arg0, %c0_i32, %c0_i32_0 : i32, i32, i32
  }
  func.func @transform_3(%arg0: i32, %arg1: i32) -> (i32, i32, i32) {
    %c0_i32 = arith.constant 0 : i32
    %c0_i32_0 = arith.constant 0 : i32
    %c0_i32_1 = arith.constant 0 : i32
    return %arg0, %c0_i32, %c0_i32_0 : i32, i32, i32
  }
  func.func @transform_4(%arg0: i32, %arg1: i32) -> (i32, i32, i32) {
    %c0_i32 = arith.constant 0 : i32
    %c0_i32_0 = arith.constant 0 : i32
    %c0_i32_1 = arith.constant 0 : i32
    return %arg0, %c0_i32, %c0_i32_0 : i32, i32, i32
  }
  func.func @transform_5(%arg0: i32, %arg1: i32) -> (i32, i32, i32) {
    %c0_i32 = arith.constant 0 : i32
    %c0_i32_0 = arith.constant 0 : i32
    return %arg0, %c0_i32, %arg1 : i32, i32, i32
  }
}

</mosaic_0001>

<bundles_post_ra>
// kernel: deepsic_forward_batched.1
= control target key start
LH: loop header
LB: loop body
LE: loop exit
PB: predicated region body
PF: predicated region fallthrough
CT: control target
= control target key end

     0   :  { %s1062_s18 = smov 0   ;;  %s1064_s19 = smov 0   ;;  %s1189_s0 = inlined_call_operand.vmem [shape: f32[4,8,256], index: 0, kind: input, shape index: {}]   ;;  %s1190_s1 = inlined_call_operand.vmem [shape: f32[4,128,8], index: 1, kind: input, shape index: {}]   ;;  %s1191_s2 = inlined_call_operand.vmem [shape: f32[4,128,1], index: 2, kind: input, shape index: {}]   ;;  %s1192_s3 = inlined_call_operand.vmem [shape: f32[4,8,128], index: 3, kind: input, shape index: {}]   ;;  %s1193_s4 = inlined_call_operand.vmem [shape: f32[4,8,1], index: 4, kind: input, shape index: {}]   ;;  %s1194_s5 = inlined_call_operand.vmem [shape: f32[4,8,256], index: 5, kind: output, shape index: {}]  }
   0x1   :  { %s1066_s20 = smov 0  }
   0x2 LB: > { %s27_s21 = sadd.s32 1, %s1024_s19  ;;  %p913_p0 = scmp.ge.s32.totalorder %s1028_s20, 1  ;;  %s1028_s20 = sphi %s1066_s20, %s15_s20   ;;  %s1024_s19 = sphi %s1064_s19, %s1196_s19   ;;  %s1020_s18 = sphi %s1062_s18, %s1195_s18  }
   0x3   : > { %p29_p1 = scmp.ge.s32.totalorder %s27_s21, 4  ;;  %p246_p2 = scmp.lt.s32.totalorder %s1028_s20, 5 }
   0x5   : > { %s1198_s21 = smov (%p29_p1, %s27_s21), 0  ;;  %p247_p3 = pnand %p913_p0, %p246_p2 }
   0x6   : > { %p301_p4 = scmp.lt.s32.totalorder (!%p247_p3), %s1020_s18, 3  ;;  %v1030_v0 = vmov (!%p247_p3), 0.0   ;;  %v1031_v1 = vmov (!%p247_p3), 0   ;;  %vm453_vm0 = vcmask (!%p247_p3), 64512  }
   0x7   : > { %250 = sbr.rel (%p247_p3) target bundleno = 519 (0x207), region = 40  ;;  %566 = vmatprep.mubr.f32.mxu0 (!%p247_p3), %v1030_v0  ;;  %1004 = vset.pattern.permute.xlu0 (!%p247_p3), %v1031_v1 }
   0x8   : > { %1005 = vset.pattern.permute.xlu1 (!%p247_p3), %v1031_v1  ;;  %765 = vmatprep.mubr.f32.mxu1 (!%p247_p3), %v1030_v0 }
   0xe   : > { %s1200_s18 = smov (!%p301_p4, %s1020_s18), 3 }
   0xf   : > { %s942_s22 = sshll.u32 %s1200_s18, 4  ;;  %s943_s23 = sshll.u32 %s1200_s18, 7 }
  0x10   : > { %s308_s26 = scalar_lea.vmem %s1189_s0, %s942_s22  ;;  %s1094_s29 = scalar_lea.vmem %s1190_s1, %s943_s23 }
  0x11   : > { %v339_v2 = vld [vmem:[%s308_s26 + $0x8] sm:$0xff]  ;;  %v338_v3 = vld [vmem:[%s308_s26] sm:$0xff]  ;;  %s1100_s7 = scalar_lea.vmem %s1191_s2, %s943_s23  ;;  %v342_v8 = vld [vmem:[%s1094_s29 + $0x10] sm:$0xff]  ;;  %s920_s8 = sshll.u32 %s1200_s18, 3 }
  0x12   : > { %v340_v4 = vld [vmem:[%s1094_s29] sm:$0xff]  ;;  %502 = vmatprep.subr.mxu0 %v339_v2  ;;  %v341_v5 = vld [vmem:[%s1094_s29 + $0x8] sm:$0xff]  ;;  %v359_v7 = vld [vmem:[%s1100_s7 + $0x10] sm:$0xff]  ;;  %s327_s11 = scalar_lea.vmem %s1193_s4, %s920_s8  ;;  %s323_s14 = scalar_lea.vmem %s1192_s3, %s920_s8 }
  0x13   : > { %503 = vmatpush1.msra.mxu0 %v338_v3  ;;  %v357_v6 = vld [vmem:[%s1100_s7] sm:$0xff]  ;;  %v358_v9 = vld [vmem:[%s1100_s7 + $0x8] sm:$0xff]  ;;  %385 = vperm.xlu1 %1005, %v359_v7   ;;  %v360_v10 = vld [vmem:[%s1100_s7 + $0x18] sm:$0xff]  ;;  %s336_s17 = scalar_lea.vmem %s1194_s5, %s942_s22 }
  0x14   : > { %924 = vmatmul.mubr.msk.f32.vlgmr.msra.gmra.mrb[0].mxu0 %vm453_vm0, %v340_v4  ;;  %375 = vperm.xlu0 %1004, %v357_v6   ;;  %v343_v11 = vld [vmem:[%s1094_s29 + $0x18] sm:$0xff]  ;;  %v361_v12 = vld [vmem:[%s1100_s7 + $0x20] sm:$0xff]  ;;  %v362_v13 = vld [vmem:[%s1100_s7 + $0x28] sm:$0xff] }
  0x15   : > { %572 = vmatprep.mubr.f32.mxu0 %v1030_v0  ;;  %v344_v14 = vld [vmem:[%s1094_s29 + $0x20] sm:$0xff]  ;;  %v363_v15 = vld [vmem:[%s1100_s7 + $0x30] sm:$0xff]  ;;  %v364_v16 = vld [vmem:[%s1100_s7 + $0x38] sm:$0xff] }
  0x16   : > { %v345_v17 = vld [vmem:[%s1094_s29 + $0x28] sm:$0xff]  ;;  %v365_v18 = vld [vmem:[%s1100_s7 + $0x40] sm:$0xff]  ;;  %v346_v20 = vld [vmem:[%s1094_s29 + $0x30] sm:$0xff] }
  0x17   : > { %390 = vperm.xlu1 %1005, %v360_v10   ;;  %v366_v19 = vld [vmem:[%s1100_s7 + $0x48] sm:$0xff]  ;;  %v367_v21 = vld [vmem:[%s1100_s7 + $0x50] sm:$0xff]  ;;  %v368_v22 = vld [vmem:[%s1100_s7 + $0x58] sm:$0xff] }
  0x18   : > { %925 = vmatmul.mubr.msk.f32.gmra.mrb[2].mxu0 %vm453_vm0, %v341_v5  ;;  %380 = vperm.xlu0 %1004, %v358_v9   ;;  %v347_v23 = vld [vmem:[%s1094_s29 + $0x38] sm:$0xff]  ;;  %v369_v24 = vld [vmem:[%s1100_s7 + $0x60] sm:$0xff]  ;;  %v370_v25 = vld [vmem:[%s1100_s7 + $0x68] sm:$0xff] }
  0x19   : > { %578 = vmatprep.mubr.f32.mxu0 %v1030_v0  ;;  %v348_v26 = vld [vmem:[%s1094_s29 + $0x40] sm:$0xff]  ;;  %v371_v27 = vld [vmem:[%s1100_s7 + $0x70] sm:$0xff]  ;;  %v372_v28 = vld [vmem:[%s1100_s7 + $0x78] sm:$0xff] }
  0x1a   : > { %v349_v29 = vld [vmem:[%s1094_s29 + $0x48] sm:$0xff]  ;;  %v695_v30 = vld [vmem:[%s327_s11] sm:$0xff]  ;;  %v350_v31 = vld [vmem:[%s1094_s29 + $0x50] sm:$0xff] }
  0x1b   : > { %400 = vperm.xlu1 %1005, %v362_v13   ;;  %v351_v32 = vld [vmem:[%s1094_s29 + $0x58] sm:$0xff]  ;;  %v352_v33 = vld [vmem:[%s1094_s29 + $0x60] sm:$0xff]  ;;  %v353_v34 = vld [vmem:[%s1094_s29 + $0x68] sm:$0xff] }
  0x1c   : > { %926 = vmatmul.mubr.msk.f32.gmra.mrb[4].mxu0 %vm453_vm0, %v342_v8  ;;  %395 = vperm.xlu0 %1004, %v361_v12   ;;  %v354_v35 = vld [vmem:[%s1094_s29 + $0x70] sm:$0xff]  ;;  %v355_v36 = vld [vmem:[%s1094_s29 + $0x78] sm:$0xff] }
  0x1d   : > { %584 = vmatprep.mubr.f32.mxu0 %v1030_v0 }
  0x1f   : > { %410 = vperm.xlu1 %1005, %v364_v16  }
  0x20   : > { %927 = vmatmul.mubr.msk.f32.gmra.mrb[6].mxu0 %vm453_vm0, %v343_v11  ;;  %405 = vperm.xlu0 %1004, %v363_v15  }
  0x21   : > { %590 = vmatprep.mubr.f32.mxu0 %v1030_v0 }
  0x23   : > { %420 = vperm.xlu1 %1005, %v366_v19  }
  0x24   : > { %928 = vmatmul.mubr.msk.f32.gmra.mrb[8].mxu0 %vm453_vm0, %v344_v14  ;;  %415 = vperm.xlu0 %1004, %v365_v18  }
  0x25   : > { %596 = vmatprep.mubr.f32.mxu0 %v1030_v0 }
  0x27   : > { %430 = vperm.xlu1 %1005, %v368_v22  }
  0x28   : > { %929 = vmatmul.mubr.msk.f32.gmra.mrb[10].mxu0 %vm453_vm0, %v345_v17  ;;  %425 = vperm.xlu0 %1004, %v367_v21  }
  0x29   : > { %602 = vmatprep.mubr.f32.mxu0 %v1030_v0 }
  0x2b   : > { %440 = vperm.xlu1 %1005, %v370_v25  }
  0x2c   : > { %930 = vmatmul.mubr.msk.f32.gmra.mrb[12].mxu0 %vm453_vm0, %v346_v20  ;;  %435 = vperm.xlu0 %1004, %v369_v24  }
  0x2d   : > { %608 = vmatprep.mubr.f32.mxu0 %v1030_v0 }
  0x2f   : > { %450 = vperm.xlu1 %1005, %v372_v28  }
  0x30   : > { %931 = vmatmul.mubr.msk.f32.gmra.mrb[14].mxu0 %vm453_vm0, %v347_v23  ;;  %445 = vperm.xlu0 %1004, %v371_v27  }
  0x31   : > { %614 = vmatprep.mubr.f32.mxu0 %v1030_v0 }
  0x34   : > { %932 = vmatmul.mubr.msk.f32.gmra.mrb[16].mxu0 %vm453_vm0, %v348_v26  ;;  %698 = vperm.xlu0 %1004, %v695_v30  }
  0x35   : > { %620 = vmatprep.mubr.f32.mxu0 %v1030_v0 }
  0x38   : > { %933 = vmatmul.mubr.msk.f32.gmra.mrb[18].mxu0 %vm453_vm0, %v349_v29 }
  0x39   : > { %626 = vmatprep.mubr.f32.mxu0 %v1030_v0 }
  0x3c   : > { %934 = vmatmul.mubr.msk.f32.gmra.mrb[20].mxu0 %vm453_vm0, %v350_v31 }
  0x3d   : > { %632 = vmatprep.mubr.f32.mxu0 %v1030_v0 }
  0x40   : > { %935 = vmatmul.mubr.msk.f32.gmra.mrb[22].mxu0 %vm453_vm0, %v351_v32 }
  0x41   : > { %638 = vmatprep.mubr.f32.mxu0 %v1030_v0 }
  0x44   : > { %936 = vmatmul.mubr.msk.f32.gmra.mrb[24].mxu0 %vm453_vm0, %v352_v33 }
  0x45   : > { %644 = vmatprep.mubr.f32.mxu0 %v1030_v0 }
  0x48   : > { %937 = vmatmul.mubr.msk.f32.gmra.mrb[26].mxu0 %vm453_vm0, %v353_v34 }
  0x49   : > { %650 = vmatprep.mubr.f32.mxu0 %v1030_v0 }
  0x4c   : > { %938 = vmatmul.mubr.msk.f32.gmra.mrb[28].mxu0 %vm453_vm0, %v354_v35 }
  0x4d   : > { %656 = vmatprep.mubr.f32.mxu0 %v1030_v0 }
  0x50   : > { %939 = vmatmul.mubr.msk.f32.gmra.mrb[30].mxu0 %vm453_vm0, %v355_v36 }
  0x92   : > { %v386_v46 = vpop.permute.xlu1 %385 }
  0x93   : > { %v376_v37 = vpop.permute.xlu0 %375 }
  0x96   : > { %v391_v57 = vpop.permute.xlu1 %390 }
  0x97   : > { %v381_v41 = vpop.permute.xlu0 %380 }
  0x9a   : > { %v401_v9 = vpop.permute.xlu1 %400 }
  0x9b   : > { %v396_v6 = vpop.permute.xlu0 %395 }
  0x9e   : > { %v411_v25 = vpop.permute.xlu1 %410 }
  0x9f   : > { %v406_v22 = vpop.permute.xlu0 %405 }
  0xe7   : > { %v568_v38 = vpop.f32.mrb[0].mxu0 }
  0xe8   : > { %v570_v39 = vpop.f32.mrb[1].mxu0  ;;  %v569_v40 = vadd.f32 %v568_v38, %v376_v37  ;;  %v416_v38 = vpop.permute.xlu0 %415 }
  0xe9   : > { %v571_v42 = vadd.f32 %v570_v39, %v376_v37 }
  0xea   : > { %v663_v48 = vmax.f32 %v569_v40, 0.0 }
  0xeb   : > { %v574_v43 = vpop.f32.mrb[2].mxu0  ;;  %v664_v50 = vmax.f32 %v571_v42, 0.0 }
  0xec   : > { %v575_v44 = vadd.f32 %v574_v43, %v381_v41  ;;  %v576_v45 = vpop.f32.mrb[3].mxu0 }
  0xed   : > { %v577_v47 = vadd.f32 %v576_v45, %v381_v41  ;;  %v421_v41 = vpop.permute.xlu1 %420 }
  0xee   : > { %v665_v49 = vmax.f32 %v575_v44, 0.0 }
  0xef   : > { %v666_v51 = vmax.f32 %v577_v47, 0.0  ;;  %v580_v52 = vpop.f32.mrb[4].mxu0 }
  0xf0   : > { %v582_v53 = vpop.f32.mrb[5].mxu0  ;;  %v948_v54 = vpack.c.bf16 %v665_v49, %v663_v48  ;;  %v581_v56 = vadd.f32 %v580_v52, %v386_v46 }
  0xf1   : > { %v946_v55 = vpack.c.bf16 %v666_v51, %v664_v50  ;;  %v583_v58 = vadd.f32 %v582_v53, %v386_v46 }
  0xf2   : > { %v667_v63 = vmax.f32 %v581_v56, 0.0 }
  0xf3   : > { %v586_v59 = vpop.f32.mrb[6].mxu0  ;;  %947 = vmatprep.subr.bf16.mxu1 %v946_v55  ;;  %v668_v1 = vmax.f32 %v583_v58, 0.0 }
  0xf4   : > { %v587_v60 = vadd.f32 %v586_v59, %v391_v57  ;;  %v588_v61 = vpop.f32.mrb[7].mxu0  ;;  %949 = vmatpush1.bf16.msra.mxu1 %v948_v54  ;;  %v426_v54 = vpop.permute.xlu0 %425 }
  0xf5   : > { %v589_v62 = vadd.f32 %v588_v61, %v391_v57  ;;  %v431_v57 = vpop.permute.xlu1 %430 }
  0xf6   : > { %v669_v0 = vmax.f32 %v587_v60, 0.0 }
  0xf7   : > { %v670_v2 = vmax.f32 %v589_v62, 0.0  ;;  %v592_v3 = vpop.f32.mrb[8].mxu0 }
  0xf8   : > { %v952_v4 = vpack.c.bf16 %v669_v0, %v667_v63  ;;  %v594_v5 = vpop.f32.mrb[9].mxu0  ;;  %v593_v8 = vadd.f32 %v592_v3, %v396_v6 }
  0xf9   : > { %v950_v7 = vpack.c.bf16 %v670_v2, %v668_v1  ;;  %v595_v10 = vadd.f32 %v594_v5, %v396_v6  ;;  %v436_v6 = vpop.permute.xlu0 %435 }
  0xfa   : > { %v671_v15 = vmax.f32 %v593_v8, 0.0 }
  0xfb   : > { %v598_v11 = vpop.f32.mrb[10].mxu0  ;;  %951 = vmatprep.subr.bf16.mxu1 %v950_v7  ;;  %v672_v17 = vmax.f32 %v595_v10, 0.0 }
  0xfc   : > { %v599_v12 = vadd.f32 %v598_v11, %v401_v9  ;;  %v600_v13 = vpop.f32.mrb[11].mxu0  ;;  %953 = vmatpush1.bf16.msra.mxu1 %v952_v4 }
  0xfd   : > { %v601_v14 = vadd.f32 %v600_v13, %v401_v9  ;;  %v441_v9 = vpop.permute.xlu1 %440 }
  0xfe   : > { %v673_v16 = vmax.f32 %v599_v12, 0.0 }
  0xff   : > { %v674_v18 = vmax.f32 %v601_v14, 0.0  ;;  %v604_v19 = vpop.f32.mrb[12].mxu0 }
 0x100   : > { %v956_v20 = vpack.c.bf16 %v673_v16, %v671_v15  ;;  %v606_v21 = vpop.f32.mrb[13].mxu0  ;;  %v605_v24 = vadd.f32 %v604_v19, %v406_v22 }
 0x101   : > { %v954_v23 = vpack.c.bf16 %v674_v18, %v672_v17  ;;  %v607_v26 = vadd.f32 %v606_v21, %v406_v22  ;;  %v446_v22 = vpop.permute.xlu0 %445 }
 0x102   : > { %v675_v31 = vmax.f32 %v605_v24, 0.0 }
 0x103   : > { %v610_v27 = vpop.f32.mrb[14].mxu0  ;;  %955 = vmatprep.subr.bf16.mxu1 %v954_v23  ;;  %v676_v33 = vmax.f32 %v607_v26, 0.0 }
 0x104   : > { %v611_v28 = vadd.f32 %v610_v27, %v411_v25  ;;  %v612_v29 = vpop.f32.mrb[15].mxu0  ;;  %957 = vmatpush1.bf16.msra.mxu1 %v956_v20 }
 0x105   : > { %v613_v30 = vadd.f32 %v612_v29, %v411_v25  ;;  %v451_v25 = vpop.permute.xlu1 %450 }
 0x106   : > { %v677_v32 = vmax.f32 %v611_v28, 0.0 }
 0x107   : > { %v678_v34 = vmax.f32 %v613_v30, 0.0  ;;  %v616_v35 = vpop.f32.mrb[16].mxu0 }
 0x108   : > { %v960_v36 = vpack.c.bf16 %v677_v32, %v675_v31  ;;  %v618_v37 = vpop.f32.mrb[17].mxu0  ;;  %v617_v40 = vadd.f32 %v616_v35, %v416_v38 }
 0x109   : > { %v958_v39 = vpack.c.bf16 %v678_v34, %v676_v33  ;;  %v619_v42 = vadd.f32 %v618_v37, %v416_v38  ;;  %v356_v37 = vld [vmem:[%s323_s14] sm:$0xff]  ;;  %v699_v38 = vpop.permute.xlu0 %698 }
 0x10a   : > { %v679_v47 = vmax.f32 %v617_v40, 0.0 }
 0x10b   : > { %v622_v43 = vpop.f32.mrb[18].mxu0  ;;  %959 = vmatprep.subr.bf16.mxu1 %v958_v39  ;;  %v680_v49 = vmax.f32 %v619_v42, 0.0 }
 0x10c   : > { %v623_v44 = vadd.f32 %v622_v43, %v421_v41  ;;  %v624_v45 = vpop.f32.mrb[19].mxu0  ;;  %961 = vmatpush1.bf16.msra.mxu1 %v960_v36 }
 0x10d   : > { %v625_v46 = vadd.f32 %v624_v45, %v421_v41 }
 0x10e   : > { %v681_v48 = vmax.f32 %v623_v44, 0.0 }
 0x10f   : > { %v682_v50 = vmax.f32 %v625_v46, 0.0  ;;  %v628_v51 = vpop.f32.mrb[20].mxu0 }
 0x110   : > { %v964_v52 = vpack.c.bf16 %v681_v48, %v679_v47  ;;  %v630_v53 = vpop.f32.mrb[21].mxu0  ;;  %v629_v56 = vadd.f32 %v628_v51, %v426_v54 }
 0x111   : > { %v962_v55 = vpack.c.bf16 %v682_v50, %v680_v49  ;;  %v631_v58 = vadd.f32 %v630_v53, %v426_v54 }
 0x112   : > { %v683_v63 = vmax.f32 %v629_v56, 0.0 }
 0x113   : > { %v634_v59 = vpop.f32.mrb[22].mxu0  ;;  %963 = vmatprep.subr.bf16.mxu1 %v962_v55  ;;  %v684_v1 = vmax.f32 %v631_v58, 0.0 }
 0x114   : > { %v635_v60 = vadd.f32 %v634_v59, %v431_v57  ;;  %v636_v61 = vpop.f32.mrb[23].mxu0  ;;  %965 = vmatpush1.bf16.msra.mxu1 %v964_v52 }
 0x115   : > { %v637_v62 = vadd.f32 %v636_v61, %v431_v57 }
 0x116   : > { %v685_v0 = vmax.f32 %v635_v60, 0.0 }
 0x117   : > { %v686_v2 = vmax.f32 %v637_v62, 0.0  ;;  %v640_v3 = vpop.f32.mrb[24].mxu0 }
 0x118   : > { %v968_v4 = vpack.c.bf16 %v685_v0, %v683_v63  ;;  %v642_v5 = vpop.f32.mrb[25].mxu0  ;;  %v641_v8 = vadd.f32 %v640_v3, %v436_v6 }
 0x119   : > { %v966_v7 = vpack.c.bf16 %v686_v2, %v684_v1  ;;  %v643_v10 = vadd.f32 %v642_v5, %v436_v6 }
 0x11a   : > { %v687_v15 = vmax.f32 %v641_v8, 0.0 }
 0x11b   : > { %v646_v11 = vpop.f32.mrb[26].mxu0  ;;  %967 = vmatprep.subr.bf16.mxu1 %v966_v7  ;;  %v688_v17 = vmax.f32 %v643_v10, 0.0 }
 0x11c   : > { %v647_v12 = vadd.f32 %v646_v11, %v441_v9  ;;  %v648_v13 = vpop.f32.mrb[27].mxu0  ;;  %969 = vmatpush1.bf16.msra.mxu1 %v968_v4 }
 0x11d   : > { %v649_v14 = vadd.f32 %v648_v13, %v441_v9 }
 0x11e   : > { %v689_v16 = vmax.f32 %v647_v12, 0.0 }
 0x11f   : > { %v690_v18 = vmax.f32 %v649_v14, 0.0  ;;  %v652_v19 = vpop.f32.mrb[28].mxu0 }
 0x120   : > { %v972_v20 = vpack.c.bf16 %v689_v16, %v687_v15  ;;  %v654_v21 = vpop.f32.mrb[29].mxu0  ;;  %v653_v24 = vadd.f32 %v652_v19, %v446_v22 }
 0x121   : > { %v970_v23 = vpack.c.bf16 %v690_v18, %v688_v17  ;;  %v655_v26 = vadd.f32 %v654_v21, %v446_v22 }
 0x122   : > { %v691_v31 = vmax.f32 %v653_v24, 0.0 }
 0x123   : > { %v658_v27 = vpop.f32.mrb[30].mxu0  ;;  %971 = vmatprep.subr.bf16.mxu1 %v970_v23  ;;  %v692_v33 = vmax.f32 %v655_v26, 0.0 }
 0x124   : > { %v659_v28 = vadd.f32 %v658_v27, %v451_v25  ;;  %v660_v29 = vpop.f32.mrb[31].mxu0  ;;  %973 = vmatpush1.bf16.msra.mxu1 %v972_v20 }
 0x125   : > { %v661_v30 = vadd.f32 %v660_v29, %v451_v25 }
 0x126   : > { %v693_v32 = vmax.f32 %v659_v28, 0.0 }
 0x127   : > { %v694_v34 = vmax.f32 %v661_v30, 0.0 }
 0x128   : > { %v976_v35 = vpack.c.bf16 %v693_v32, %v691_v31 }
 0x129   : > { %v974_v36 = vpack.c.bf16 %v694_v34, %v692_v33 }
 0x12b   : > { %975 = vmatprep.subr.bf16.mxu1 %v974_v36 }
 0x12c   : > { %977 = vmatpush1.bf16.msra.mxu1 %v976_v35 }
 0x12f   : > { %766 = vmatmul.mubr.f32.vlgmr.msra.gmra.mrb[0].mxu1 %v356_v37 }
 0x202   : > { %v767_v39 = vpop.f32.mrb[0].mxu1 }
 0x203   : > { %v768_v40 = vadd.f32 %v767_v39, %v699_v38  ;;  %v769_v41 = vpop.f32.mrb[1].mxu1 }
 0x204   : > { %v770_v42 = vadd.f32 %v769_v41, %v699_v38 }
 0x205   : > { %772 = vst [vmem:[%s336_s17] sm:$0xff] %v768_v40 }
 0x206   : > { %773 = vst [vmem:[%s336_s17 + $0x8] sm:$0xff] %v770_v42 }
 0x207 PF: > { %s15_s20 = sadd.s32 1, %s1028_s20   ;;  %s1195_s18 = smov %s1024_s19 }
 0x208   : > { %p12_p5 = scmp.ge.s32.totalorder %s15_s20, 6   ;;  %s1196_s19 = smov %s1198_s21 }
 0x20a   :  { %14 = sbr.rel (!%p12_p5) target bundleno = 2 (0x2), region = 82 }

</bundles_post_ra>
